<compile_context>
chip_gen: v5e
topology: v5e:2x2
jax: 0.10.0
libtpu: 0.0.40
codegen_flags: <defaults>
</compile_context>

<pallas_src>
import functools

import jax
import jax.numpy as jnp
from jax.experimental import pallas as pl
from jax.experimental.pallas import tpu as pltpu


def _round_up(n, m):
    return ((n + m - 1) // m) * m


def _ce_wrapper_kernel(x_ref, w_ref, b_ref, labels_ref, out_ref, *, c_chunk):
    tile_b = x_ref.shape[0]
    c_pad = w_ref.shape[1]
    n_chunks = c_pad // c_chunk

    labels = labels_ref[...]                       # (tile_b, 1) int32

    m = None                                       # running row max of y
    l = None                                       # running sum(exp(y - m))
    y_lab = jnp.zeros((tile_b, 1), jnp.float32)    # gathered label logit

    # Static C-chunked online softmax: only a few (tile_b, c_chunk) values
    # live at a time, accumulators are (tile_b, 1) columns.
    for ci in range(n_chunks):
        c0 = ci * c_chunk
        y = jnp.dot(x_ref[...], w_ref[:, c0:c0 + c_chunk],
                    preferred_element_type=jnp.float32)
        y = y + b_ref[:, c0:c0 + c_chunk]          # pad columns ~= -1e30

        # torch.gather(y, -1, labels): exactly one hit per row across chunks.
        col_ids = jax.lax.broadcasted_iota(jnp.int32, (1, c_chunk), 1) + c0
        hit = col_ids == labels                    # broadcast -> (tile_b, c_chunk)
        y_lab = y_lab + jnp.sum(jnp.where(hit, y, 0.0), axis=-1, keepdims=True)

        m_chunk = jnp.max(y, axis=-1, keepdims=True)
        if m is None:
            m = m_chunk
            l = jnp.sum(jnp.exp(y - m), axis=-1, keepdims=True)
        else:
            m_new = jnp.maximum(m, m_chunk)
            l = l * jnp.exp(m - m_new) + jnp.sum(jnp.exp(y - m_new),
                                                 axis=-1, keepdims=True)
            m = m_new

    # sum_c exp(y_c - y_label) == (sum_c exp(y_c - m)) * exp(m - y_label).
    # (Overflows to inf in the same regime the unstabilized reference does.)
    result = l * jnp.exp(m - y_lab)                # (tile_b, 1) f32

    # Lane-dense epilogue: one 128x128 XLU transpose per 128-row chunk, then
    # a wide unmasked store into the (1, tile_b) output row.
    for r0 in range(0, tile_b, 128):
        col = result[r0:r0 + 128, :]                              # (128, 1)
        row = jnp.transpose(jnp.broadcast_to(col, (128, 128)))[0:1, :]
        out_ref[:, r0:r0 + 128] = row.astype(out_ref.dtype)


def cross_entropy_wrapper(x, w, b, labels, *, tile_b=128, c_chunk=512,
                          mxu_dtype=jnp.bfloat16):
    """x: (B, D), w: (D, C), b: (C,), labels: (B,) int -> (B, 1) f32."""
    B, D = x.shape
    C = w.shape[1]
    assert tile_b % 128 == 0, "tile_b must be lane-aligned (multiple of 128)"

    # Class padding / chunking: lane-align to 128; chunk at <= c_chunk lanes.
    if C <= c_chunk:
        c_pad = _round_up(C, 128)
        chunk = c_pad
    else:
        c_pad = _round_up(C, c_chunk)
        chunk = c_chunk

    b_rows = _round_up(B, tile_b)
    pad_rows = b_rows - B

    # Only pad the ragged batch tail (avoid rewriting all of x in HBM).
    x_c = x.astype(mxu_dtype)
    lab_c = labels.astype(jnp.int32)
    if pad_rows:
        x_c = jnp.pad(x_c, ((0, pad_rows), (0, 0)))
        lab_c = jnp.pad(lab_c, (0, pad_rows))          # pad labels -> class 0
    lab_c = lab_c.reshape(b_rows, 1)

    w_c = w.astype(mxu_dtype)
    if c_pad != C:
        w_c = jnp.pad(w_c, ((0, 0), (0, c_pad - C)))
    # Pad classes get a -1e30 bias so exp() underflows them to exactly 0.
    b_c = jnp.full((1, c_pad), -1e30, jnp.float32).at[0, :C].set(
        b.astype(jnp.float32))

    itemsize = jnp.dtype(mxu_dtype).itemsize
    w_bytes = D * c_pad * itemsize
    x_tile_bytes = tile_b * D * itemsize
    # Resident W + bias (single-buffered) + double-buffered x/labels/out + slack.
    vmem_needed = (w_bytes + c_pad * 4) + 2 * (x_tile_bytes + tile_b * 4 +
                                               tile_b * 4) + (4 << 20)
    vmem_limit = int(min(max(vmem_needed, 32 << 20), 64 << 20))

    cost = pl.CostEstimate(
        flops=2 * b_rows * D * c_pad,
        transcendentals=b_rows * c_pad,
        bytes_accessed=b_rows * D * itemsize + w_bytes + c_pad * 4
                       + b_rows * 4 + b_rows * 4)

    grid = (b_rows // tile_b,)
    out = pl.pallas_call(
        functools.partial(_ce_wrapper_kernel, c_chunk=chunk),
        out_shape=jax.ShapeDtypeStruct((1, b_rows), jnp.float32),
        grid=grid,
        in_specs=[
            pl.BlockSpec((tile_b, D), lambda i: (i, 0)),          # x: streamed
            pl.BlockSpec((D, c_pad), lambda i: (0, 0),
                         pipeline_mode=pl.Buffered(1)),           # W: resident
            pl.BlockSpec((1, c_pad), lambda i: (0, 0),
                         pipeline_mode=pl.Buffered(1)),           # bias: resident
            pl.BlockSpec((tile_b, 1), lambda i: (i, 0)),          # labels
        ],
        out_specs=pl.BlockSpec((1, tile_b), lambda i: (0, i)),    # lane-dense
        compiler_params=pltpu.CompilerParams(
            dimension_semantics=("parallel",),
            vmem_limit_bytes=vmem_limit),
        cost_estimate=cost,
    )(x_c, w_c, b_c, lab_c)

    return out[0, :B].reshape(B, 1)


def _reference(x, w, b, labels):
    y = jnp.dot(x, w, precision=jax.lax.Precision.HIGHEST) + b[None, :]
    gathered = jnp.take_along_axis(y, labels[:, None].astype(jnp.int32), axis=-1)
    return jnp.sum(jnp.exp(y - gathered), axis=-1, keepdims=True)


if __name__ == "__main__":
    key = jax.random.PRNGKey(0)
    k_x, k_w, k_b, k_l = jax.random.split(key, 4)

    # Small shapes consistent with the wrapped Linear "model":
    # batch=8, hidden=32, classes=16.
    B, D, C = 8, 32, 16
    x = jax.random.normal(k_x, (B, D), dtype=jnp.float32)
    w = jax.random.normal(k_w, (D, C), dtype=jnp.float32) * 0.1
    b = jax.random.normal(k_b, (C,), dtype=jnp.float32) * 0.1
    labels = jax.random.randint(k_l, (B,), 0, C, dtype=jnp.int32)

    ref = _reference(x, w, b, labels)

    # f32 MXU path.
    out_f32 = jax.block_until_ready(
        jax.jit(functools.partial(cross_entropy_wrapper,
                                  mxu_dtype=jnp.float32))(x, w, b, labels))
    assert out_f32.shape == (B, 1)
    assert jnp.allclose(out_f32, ref, rtol=5e-3, atol=5e-3)

    # Default bf16 MXU path: compare against a bf16-rounded-input reference.
    ref_b16 = _reference(x.astype(jnp.bfloat16).astype(jnp.float32),
                         w.astype(jnp.bfloat16).astype(jnp.float32), b, labels)
    out_b16 = jax.block_until_ready(
        jax.jit(cross_entropy_wrapper)(x, w, b, labels))
    assert out_b16.shape == (B, 1)
    assert jnp.allclose(out_b16, ref_b16, rtol=2e-2, atol=2e-2)

    # Ragged batch + multi-chunk classes (3 batch tiles, 2 class chunks).
    B2, D2, C2 = 272, 64, 600
    x2 = jax.random.normal(k_x, (B2, D2), dtype=jnp.float32)
    w2 = jax.random.normal(k_w, (D2, C2), dtype=jnp.float32) * 0.05
    b2 = jax.random.normal(k_b, (C2,), dtype=jnp.float32) * 0.05
    labels2 = jax.random.randint(k_l, (B2,), 0, C2, dtype=jnp.int32)
    ref2 = _reference(x2.astype(jnp.bfloat16).astype(jnp.float32),
                      w2.astype(jnp.bfloat16).astype(jnp.float32), b2, labels2)
    out2 = jax.block_until_ready(
        jax.jit(cross_entropy_wrapper)(x2, w2, b2, labels2))
    assert out2.shape == (B2, 1)
    assert jnp.allclose(out2, ref2, rtol=2e-2, atol=2e-2)

    print("KERNEL_OK")
</pallas_src>

<mosaic_0001>
module attributes {stable_mosaic.version = 11 : i64} {
  func.func @_ce_wrapper_kernel(%arg0: i32, %arg1: memref<128x32xf32, #tpu.memory_space<vmem>>, %arg2: memref<32x128xf32, #tpu.memory_space<vmem>>, %arg3: memref<1x128xf32, #tpu.memory_space<vmem>>, %arg4: memref<128x1xi32, #tpu.memory_space<vmem>>, %arg5: memref<1x128xf32, #tpu.memory_space<vmem>>) attributes {dimension_semantics = [#tpu.dimension_semantics<parallel>], iteration_bounds = array<i64: 1>, scalar_prefetch = 0 : i64, scratch_operands = 0 : i64, tpu.core_type = #tpu.core_type<tc>, window_params = [{transform_indices = @transform_0, window_bounds = array<i64: 128, 32>}, {pipeline_mode = #tpu.pipeline_mode<synchronous>, transform_indices = @transform_1, window_bounds = array<i64: 32, 128>}, {pipeline_mode = #tpu.pipeline_mode<synchronous>, transform_indices = @transform_2, window_bounds = array<i64: 1, 128>}, {transform_indices = @transform_3, window_bounds = array<i64: 128, 1>}, {transform_indices = @transform_4, window_bounds = array<i64: 1, 128>}]} {
    %c0 = arith.constant 0 : index
    %c0_0 = arith.constant 0 : index
    %0 = vector.load %arg4[%c0, %c0_0] : memref<128x1xi32, #tpu.memory_space<vmem>>, vector<128x1xi32>
    %cst = arith.constant 0.000000e+00 : f32
    %1 = vector.broadcast %cst : f32 to vector<128x1xf32>
    %c0_1 = arith.constant 0 : index
    %c0_2 = arith.constant 0 : index
    %2 = vector.load %arg1[%c0_1, %c0_2] : memref<128x32xf32, #tpu.memory_space<vmem>>, vector<128x32xf32>
    %c0_3 = arith.constant 0 : index
    %c0_4 = arith.constant 0 : index
    %3 = vector.load %arg2[%c0_3, %c0_4] : memref<32x128xf32, #tpu.memory_space<vmem>>, vector<32x128xf32>
    %cst_5 = arith.constant dense<0.000000e+00> : vector<128x128xf32>
    %4 = tpu.matmul %2, %3, %cst_5 {dimension_numbers = #tpu.dot_dimension_numbers<[1], [0], [0], [1], [0, 0, 1, 1], [], []>} : vector<128x32xf32>, vector<32x128xf32>, vector<128x128xf32> -> vector<128x128xf32>
    %c0_6 = arith.constant 0 : index
    %c0_7 = arith.constant 0 : index
    %5 = vector.load %arg3[%c0_6, %c0_7] : memref<1x128xf32, #tpu.memory_space<vmem>>, vector<1x128xf32>
    %6 = vector.broadcast %5 : vector<1x128xf32> to vector<128x128xf32>
    %7 = arith.addf %4, %6 : vector<128x128xf32>
    %8 = tpu.iota {dimensions = array<i32: 1>} : vector<1x128xi32>
    %c0_i32 = arith.constant 0 : i32
    %9 = vector.broadcast %c0_i32 : i32 to vector<1x128xi32>
    %10 = arith.addi %8, %9 : vector<1x128xi32>
    %11 = vector.broadcast %10 : vector<1x128xi32> to vector<128x128xi32>
    %12 = vector.broadcast %0 : vector<128x1xi32> to vector<128x128xi32>
    %13 = arith.cmpi eq, %11, %12 : vector<128x128xi32>
    %cst_8 = arith.constant 0.000000e+00 : f32
    %14 = vector.broadcast %cst_8 : f32 to vector<128x128xf32>
    %15 = arith.select %13, %7, %14 : vector<128x128xi1>, vector<128x128xf32>
    %cst_9 = arith.constant dense<0.000000e+00> : vector<128xf32>
    %16 = vector.multi_reduction <add>, %15, %cst_9 [1] : vector<128x128xf32> to vector<128xf32>
    %17 = vector.shape_cast %16 : vector<128xf32> to vector<128x1xf32>
    %18 = arith.addf %1, %17 : vector<128x1xf32>
    %cst_10 = arith.constant dense<0xFF800000> : vector<128xf32>
    %19 = vector.multi_reduction <maximumf>, %7, %cst_10 [1] : vector<128x128xf32> to vector<128xf32>
    %20 = vector.shape_cast %19 : vector<128xf32> to vector<128x1xf32>
    %21 = vector.broadcast %20 : vector<128x1xf32> to vector<128x128xf32>
    %22 = arith.subf %7, %21 : vector<128x128xf32>
    %23 = math.exp %22 : vector<128x128xf32>
    %cst_11 = arith.constant dense<0.000000e+00> : vector<128xf32>
    %24 = vector.multi_reduction <add>, %23, %cst_11 [1] : vector<128x128xf32> to vector<128xf32>
    %25 = vector.shape_cast %24 : vector<128xf32> to vector<128x1xf32>
    %26 = arith.subf %20, %18 : vector<128x1xf32>
    %27 = math.exp %26 : vector<128x1xf32>
    %28 = arith.mulf %25, %27 : vector<128x1xf32>
    %29 = vector.shape_cast %28 : vector<128x1xf32> to vector<128x1xf32>
    %30 = vector.broadcast %29 : vector<128x1xf32> to vector<128x128xf32>
    %31 = tpu.transpose %30, [1, 0] : vector<128x128xf32> -> vector<128x128xf32>
    %32 = vector.extract_strided_slice %31 {offsets = [0, 0], sizes = [1, 128], strides = [1, 1]} : vector<128x128xf32> to vector<1x128xf32>
    %c0_12 = arith.constant 0 : index
    %c0_13 = arith.constant 0 : index
    %33 = vector.load %arg5[%c0_12, %c0_13] : memref<1x128xf32, #tpu.memory_space<vmem>>, vector<1x128xf32>
    tpu.vector_store %arg5[%c0_12, %c0_13], %32 {strides = array<i32>} : memref<1x128xf32, #tpu.memory_space<vmem>>, vector<1x128xf32>,
    return
  }
  func.func @transform_0(%arg0: i32) -> (i32, i32) {
    %c0_i32 = arith.constant 0 : i32
    %c0_i32_0 = arith.constant 0 : i32
    return %arg0, %c0_i32 : i32, i32
  }
  func.func @transform_1(%arg0: i32) -> (i32, i32) {
    %c0_i32 = arith.constant 0 : i32
    %c0_i32_0 = arith.constant 0 : i32
    %c0_i32_1 = arith.constant 0 : i32
    return %c0_i32, %c0_i32_0 : i32, i32
  }
  func.func @transform_2(%arg0: i32) -> (i32, i32) {
    %c0_i32 = arith.constant 0 : i32
    %c0_i32_0 = arith.constant 0 : i32
    %c0_i32_1 = arith.constant 0 : i32
    return %c0_i32, %c0_i32_0 : i32, i32
  }
  func.func @transform_3(%arg0: i32) -> (i32, i32) {
    %c0_i32 = arith.constant 0 : i32
    %c0_i32_0 = arith.constant 0 : i32
    return %arg0, %c0_i32 : i32, i32
  }
  func.func @transform_4(%arg0: i32) -> (i32, i32) {
    %c0_i32 = arith.constant 0 : i32
    %c0_i32_0 = arith.constant 0 : i32
    return %c0_i32, %arg0 : i32, i32
  }
}

</mosaic_0001>

<bundles_post_ra>
// kernel: cross_entropy_wrapper.1
= control target key start
LH: loop header
LB: loop body
LE: loop exit
PB: predicated region body
PF: predicated region fallthrough
CT: control target
= control target key end

     0   :  { %v611_v0 = vmov 0   ;;  %vm57_vm0 = vcmask 261120   ;;  %v171_v39 = vlaneseq  ;;  %s1052_s3 = inlined_call_operand.vmem [shape: s32[128,1], index: 3, kind: input, shape index: {}]   ;;  %s1053_s1 = inlined_call_operand.vmem [shape: f32[32,128], index: 1, kind: input, shape index: {}]   ;;  %s1054_s0 = inlined_call_operand.vmem [shape: f32[128,32], index: 0, kind: input, shape index: {}]   ;;  %s1055_s2 = inlined_call_operand.vmem [shape: f32[1,128], index: 2, kind: input, shape index: {}]   ;;  %s1056_s4 = inlined_call_operand.vmem [shape: f32[1,128], index: 4, kind: output, shape index: {}]  }
   0x1   :  { %544 = vset.pattern.permute.xlu1 %v611_v0  ;;  %543 = vset.pattern.permute.xlu0 %v611_v0  ;;  %v19_v1 = vld [vmem:[%s1052_s3 + $0x10] sm:$0xff]  ;;  %v17_v2 = vld [vmem:[%s1052_s3] sm:$0xff]  ;;  %v52_v3 = vld [vmem:[%s1053_s1 + $0x18] sm:$0xff] }
   0x2   :  { %180 = vperm.xlu1 %544, %v19_v1   ;;  %174 = vperm.xlu0 %543, %v17_v2   ;;  %v51_v4 = vld [vmem:[%s1053_s1 + $0x10] sm:$0xff]  ;;  %v50_v5 = vld [vmem:[%s1053_s1 + $0x8] sm:$0xff]  ;;  %v49_v6 = vld [vmem:[%s1053_s1] sm:$0xff]  ;;  %v763_v41 = vand.u32 127, %v171_v39 }
   0x3   :  { %118 = vmatpush.msra.mxu0 %v52_v3  ;;  %530 = vmatpush.msra.mxu1 %v52_v3  ;;  %v33_v7 = vld [vmem:[%s1054_s0] sm:$0xff]  ;;  %v20_v11 = vld [vmem:[%s1052_s3 + $0x18] sm:$0xff]  ;;  %v18_v12 = vld [vmem:[%s1052_s3 + $0x8] sm:$0xff] }
   0x4   :  { %531 = vmatpush.msra.mxu2 %v52_v3  ;;  %532 = vmatpush.msra.mxu3 %v52_v3  ;;  %v37_v8 = vld [vmem:[%s1054_s0 + $0x20] sm:$0xff]  ;;  %v34_v14 = vld [vmem:[%s1054_s0 + $0x8] sm:$0xff]  ;;  %v24_v18 = vld [vmem:[%s1052_s3 + $0x38] sm:$0xff] }
   0x5   :  { %119 = vmatpush.msra.mxu0 %v51_v4  ;;  %533 = vmatpush.msra.mxu1 %v51_v4  ;;  %v41_v9 = vld [vmem:[%s1054_s0 + $0x40] sm:$0xff]  ;;  %v38_v15 = vld [vmem:[%s1054_s0 + $0x28] sm:$0xff]  ;;  %v23_v19 = vld [vmem:[%s1052_s3 + $0x30] sm:$0xff] }
   0x6   :  { %534 = vmatpush.msra.mxu2 %v51_v4  ;;  %535 = vmatpush.msra.mxu3 %v51_v4  ;;  %v45_v10 = vld [vmem:[%s1054_s0 + $0x60] sm:$0xff]  ;;  %v42_v16 = vld [vmem:[%s1054_s0 + $0x48] sm:$0xff]  ;;  %v35_v21 = vld [vmem:[%s1054_s0 + $0x10] sm:$0xff] }
   0x7   :  { %120 = vmatpush.msra.mxu0 %v50_v5  ;;  %536 = vmatpush.msra.mxu1 %v50_v5  ;;  %v21_v13 = vld [vmem:[%s1052_s3 + $0x20] sm:$0xff]  ;;  %v46_v17 = vld [vmem:[%s1054_s0 + $0x68] sm:$0xff]  ;;  %v39_v22 = vld [vmem:[%s1054_s0 + $0x30] sm:$0xff] }
   0x8   :  { %537 = vmatpush.msra.mxu2 %v50_v5  ;;  %538 = vmatpush.msra.mxu3 %v50_v5  ;;  %v22_v20 = vld [vmem:[%s1052_s3 + $0x28] sm:$0xff]  ;;  %v43_v23 = vld [vmem:[%s1054_s0 + $0x50] sm:$0xff]  ;;  %v25_v27 = vld [vmem:[%s1052_s3 + $0x40] sm:$0xff] }
   0x9   :  { %121 = vmatpush.msra.mxu0 %v49_v6  ;;  %539 = vmatpush.msra.mxu1 %v49_v6  ;;  %v47_v24 = vld [vmem:[%s1054_s0 + $0x70] sm:$0xff]  ;;  %v26_v26 = vld [vmem:[%s1052_s3 + $0x48] sm:$0xff]  ;;  %v36_v28 = vld [vmem:[%s1054_s0 + $0x18] sm:$0xff] }
   0xa   :  { %540 = vmatpush.msra.mxu2 %v49_v6  ;;  %541 = vmatpush.msra.mxu3 %v49_v6  ;;  %v27_v25 = vld [vmem:[%s1052_s3 + $0x50] sm:$0xff]  ;;  %v40_v29 = vld [vmem:[%s1054_s0 + $0x38] sm:$0xff]  ;;  %v30_v32 = vld [vmem:[%s1052_s3 + $0x68] sm:$0xff] }
   0xb   :  { %514 = vmatmul.msk.f32.vlgmr.msra.gmra.mxu0 %vm57_vm0, %v33_v7  ;;  %518 = vmatmul.msk.f32.vlgmr.msra.gmra.mxu1 %vm57_vm0, %v37_v8  ;;  %v44_v30 = vld [vmem:[%s1054_s0 + $0x58] sm:$0xff]  ;;  %v29_v33 = vld [vmem:[%s1052_s3 + $0x60] sm:$0xff]  ;;  %v31_v36 = vld [vmem:[%s1052_s3 + $0x70] sm:$0xff] }
   0xc   :  { %522 = vmatmul.msk.f32.vlgmr.msra.gmra.mxu2 %vm57_vm0, %v41_v9  ;;  %526 = vmatmul.msk.f32.vlgmr.msra.gmra.mxu3 %vm57_vm0, %v45_v10  ;;  %v48_v31 = vld [vmem:[%s1054_s0 + $0x78] sm:$0xff]  ;;  %v772_v45 = vld [vmem:[%s1055_s2] ss:$0 sm:$0xff] }
   0xd   :  { %183 = vperm.xlu1 %544, %v20_v11   ;;  %177 = vperm.xlu0 %543, %v18_v12   ;;  %v28_v34 = vld [vmem:[%s1052_s3 + $0x58] sm:$0xff] }
   0xe   :  { %545 = vset.pattern.permute.xlu2 %v611_v0  ;;  %v32_v35 = vld [vmem:[%s1052_s3 + $0x78] sm:$0xff] }
   0xf   :  { %186 = vperm.xlu2 %545, %v21_v13  }
  0x13   :  { %515 = vmatmul.msk.f32.gmra.mxu0 %vm57_vm0, %v34_v14  ;;  %519 = vmatmul.msk.f32.gmra.mxu1 %vm57_vm0, %v38_v15 }
  0x14   :  { %523 = vmatmul.msk.f32.gmra.mxu2 %vm57_vm0, %v42_v16  ;;  %527 = vmatmul.msk.f32.gmra.mxu3 %vm57_vm0, %v46_v17 }
  0x15   :  { %195 = vperm.xlu1 %544, %v24_v18   ;;  %192 = vperm.xlu0 %543, %v23_v19  }
  0x17   :  { %189 = vperm.xlu2 %545, %v22_v20  }
  0x1b   :  { %516 = vmatmul.msk.f32.gmra.mxu0 %vm57_vm0, %v35_v21  ;;  %520 = vmatmul.msk.f32.gmra.mxu1 %vm57_vm0, %v39_v22 }
  0x1c   :  { %524 = vmatmul.msk.f32.gmra.mxu2 %vm57_vm0, %v43_v23  ;;  %528 = vmatmul.msk.f32.gmra.mxu3 %vm57_vm0, %v47_v24 }
  0x1d   :  { %204 = vperm.xlu1 %544, %v27_v25   ;;  %201 = vperm.xlu0 %543, %v26_v26  }
  0x1f   :  { %198 = vperm.xlu2 %545, %v25_v27  }
  0x23   :  { %517 = vmatmul.msk.f32.gmra.mxu0 %vm57_vm0, %v36_v28  ;;  %521 = vmatmul.msk.f32.gmra.mxu1 %vm57_vm0, %v40_v29 }
  0x24   :  { %525 = vmatmul.msk.f32.gmra.mxu2 %vm57_vm0, %v44_v30  ;;  %529 = vmatmul.msk.f32.gmra.mxu3 %vm57_vm0, %v48_v31 }
  0x25   :  { %213 = vperm.xlu1 %544, %v30_v32   ;;  %210 = vperm.xlu0 %543, %v29_v33  }
  0x27   :  { %207 = vperm.xlu2 %545, %v28_v34  }
  0x2d   :  { %219 = vperm.xlu0 %543, %v32_v35  }
  0x2f   :  { %216 = vperm.xlu2 %545, %v31_v36  }
  0x69   :  { %v187_v40 = vpop.permute.xlu2 %186 }
  0x6a   :  { %vm225_vm5 = vcmp.eq.s32.totalorder %v763_v41, %v187_v40 }
  0x71   :  { %v190_v44 = vpop.permute.xlu2 %189 }
  0x72   :  { %vm226_vm11 = vcmp.eq.s32.totalorder %v763_v41, %v190_v44 }
  0x74   :  { %v761_v37 = vpop.permute.xlu1 %180  ;;  %v175_v38 = vpop.permute.xlu0 %174 }
  0x75   :  { %vm221_vm4 = vcmp.eq.s32.totalorder %v763_v41, %v175_v38  ;;  %vm223_vm13 = vcmp.eq.s32.totalorder %v763_v41, %v761_v37 }
  0x79   :  { %v199_v52 = vpop.permute.xlu2 %198 }
  0x7a   :  { %vm229_vm3 = vcmp.eq.s32.totalorder %v763_v41, %v199_v52 }
  0x7f   :  { %v765_v42 = vpop.permute.xlu1 %183  ;;  %v178_v43 = vpop.permute.xlu0 %177 }
  0x80   :  { %vm224_vm1 = vcmp.eq.s32.totalorder %v763_v41, %v765_v42  ;;  %vm222_vm8 = vcmp.eq.s32.totalorder %v763_v41, %v178_v43 }
  0x81   :  { %v208_v12 = vpop.permute.xlu2 %207 }
  0x82   :  { %vm232_vm15 = vcmp.eq.s32.totalorder %v763_v41, %v208_v12 }
  0x87   :  { %v774_v46 = vpop.permute.xlu1 %195  ;;  %v776_v47 = vpop.permute.xlu0 %192 }
  0x88   :  { %vm228_vm2 = vcmp.eq.s32.totalorder %v763_v41, %v774_v46  ;;  %v123_v48 = vpop.f32.mrf.mxu0  ;;  %v135_v49 = vpop.f32.mrf.mxu1  ;;  %vm227_vm14 = vcmp.eq.s32.totalorder %v763_v41, %v776_v47 }
  0x89   :  { %v781_v50 = vadd.f32 %v772_v45, %v123_v48  ;;  %v784_v51 = vadd.f32 %v772_v45, %v135_v49  ;;  %v217_v20 = vpop.permute.xlu2 %216 }
  0x8a   :  { %vm235_vm12 = vcmp.eq.s32.totalorder %v763_v41, %v217_v20 }
  0x8b   :  { %309 = vmax.xlane.f32.xlu2 %v784_v51  ;;  %301 = vmax.xlane.f32.xlu1 %v781_v50  ;;  %v237_v58 = vsel %vm221_vm4, %v781_v50, 0.0  ;;  %v241_v2 = vsel %vm225_vm5, %v784_v51, 0.0 }
  0x8f   :  { %v202_v53 = vpop.permute.xlu0 %201  ;;  %v147_v54 = vpop.f32.mrf.mxu2 }
  0x90   :  { %v791_v55 = vadd.f32 %v772_v45, %v147_v54  ;;  %v159_v56 = vpop.f32.mrf.mxu3  ;;  %v205_v57 = vpop.permute.xlu1 %204  ;;  %vm230_vm9 = vcmp.eq.s32.totalorder %v763_v41, %v202_v53 }
  0x91   :  { %v796_v60 = vadd.f32 %v772_v45, %v159_v56  ;;  %v126_v61 = vpop.f32.mrf.mxu0  ;;  %v138_v5 = vpop.f32.mrf.mxu1  ;;  %vm231_vm10 = vcmp.eq.s32.totalorder %v763_v41, %v205_v57 }
  0x92   :  { %v245_v59 = vsel %vm229_vm3, %v791_v55, 0.0  ;;  %v802_v1 = vadd.f32 %v772_v45, %v126_v61  ;;  %v811_v7 = vadd.f32 %v772_v45, %v138_v5 }
  0x93   :  { %253 = vadd.xlane.f32.xlu1 %v237_v58  ;;  %269 = vadd.xlane.f32.xlu2 %v245_v59 }
  0x94   :  { %v238_v10 = vsel %vm222_vm8, %v802_v1, 0.0  ;;  %v242_v17 = vsel %vm226_vm11, %v811_v7, 0.0 }
  0x97   :  { %v211_v62 = vpop.permute.xlu0 %210  ;;  %v150_v63 = vpop.f32.mrf.mxu2 }
  0x98   :  { %vm233_vm6 = vcmp.eq.s32.totalorder %v763_v41, %v211_v62  ;;  %v162_v3 = vpop.f32.mrf.mxu3  ;;  %v214_v4 = vpop.permute.xlu1 %213  ;;  %v818_v13 = vadd.f32 %v772_v45, %v150_v63 }
  0x99   :  { %v249_v0 = vsel %vm233_vm6, %v796_v60, 0.0  ;;  %v807_v6 = vadd.f32 %v772_v45, %v162_v3  ;;  %vm234_vm7 = vcmp.eq.s32.totalorder %v763_v41, %v214_v4  ;;  %v129_v11 = vpop.f32.mrf.mxu0  ;;  %v141_v25 = vpop.f32.mrf.mxu1 }
  0x9a   :  { %277 = vadd.xlane.f32.xlu0 %v249_v0  ;;  %v246_v15 = vsel %vm230_vm9, %v818_v13, 0.0  ;;  %v833_v22 = vadd.f32 %v772_v45, %v129_v11  ;;  %v845_v26 = vadd.f32 %v772_v45, %v141_v25 }
  0x9b   :  { %261 = vadd.xlane.f32.xlu1 %v241_v2  ;;  %303 = vmax.xlane.f32.xlu2 %v802_v1  ;;  %v250_v8 = vsel %vm234_vm7, %v807_v6, 0.0 }
  0x9c   :  { %v239_v27 = vsel %vm223_vm13, %v833_v22, 0.0  ;;  %v243_v29 = vsel %vm227_vm14, %v845_v26, 0.0 }
  0x9f   :  { %v153_v9 = vpop.f32.mrf.mxu2  ;;  %v220_v38 = vpop.permute.xlu0 %219 }
  0xa0   :  { %v821_v14 = vadd.f32 %v772_v45, %v153_v9  ;;  %v165_v18 = vpop.f32.mrf.mxu3  ;;  %vm236_vm0 = vcmp.eq.s32.totalorder %v763_v41, %v220_v38 }
  0xa1   :  { %v132_v19 = vpop.f32.mrf.mxu0  ;;  %v830_v21 = vadd.f32 %v772_v45, %v165_v18  ;;  %v144_v28 = vpop.f32.mrf.mxu1 }
  0xa2   :  { %311 = vmax.xlane.f32.xlu0 %v811_v7  ;;  %v247_v16 = vsel %vm231_vm10, %v821_v14, 0.0  ;;  %v836_v23 = vadd.f32 %v772_v45, %v132_v19  ;;  %v854_v30 = vadd.f32 %v772_v45, %v144_v28 }
  0xa3   :  { %279 = vadd.xlane.f32.xlu1 %v250_v8  ;;  %255 = vadd.xlane.f32.xlu2 %v238_v10  ;;  %v251_v24 = vsel %vm235_vm12, %v830_v21, 0.0 }
  0xa4   :  { %v244_v31 = vsel %vm228_vm2, %v854_v30, 0.0  ;;  %v240_v32 = vsel %vm224_vm1, %v836_v23, 0.0 }
  0xa7   :  { %v156_v33 = vpop.f32.mrf.mxu2 }
  0xa8   :  { %v168_v34 = vpop.f32.mrf.mxu3  ;;  %v871_v35 = vadd.f32 %v772_v45, %v156_v33 }
  0xa9   :  { %v874_v36 = vadd.f32 %v772_v45, %v168_v34 }
  0xaa   :  { %271 = vadd.xlane.f32.xlu0 %v246_v15  ;;  %v248_v37 = vsel %vm232_vm15, %v871_v35, 0.0 }
  0xab   :  { %273 = vadd.xlane.f32.xlu1 %v247_v16  ;;  %263 = vadd.xlane.f32.xlu2 %v242_v17  ;;  %v252_v39 = vsel %vm236_vm0, %v874_v36, 0.0 }
  0xb2   :  { %305 = vmax.xlane.f32.xlu0 %v833_v22 }
  0xb3   :  { %307 = vmax.xlane.f32.xlu1 %v836_v23  ;;  %281 = vadd.xlane.f32.xlu2 %v251_v24 }
  0xba   :  { %257 = vadd.xlane.f32.xlu0 %v239_v27 }
  0xbb   :  { %313 = vmax.xlane.f32.xlu1 %v845_v26  ;;  %321 = vmax.xlane.f32.xlu2 %v821_v14 }
  0xc2   :  { %265 = vadd.xlane.f32.xlu0 %v243_v29 }
  0xc3   :  { %319 = vmax.xlane.f32.xlu1 %v818_v13  ;;  %315 = vmax.xlane.f32.xlu2 %v854_v30 }
  0xca   :  { %317 = vmax.xlane.f32.xlu0 %v791_v55 }
  0xcb   :  { %325 = vmax.xlane.f32.xlu1 %v796_v60  ;;  %327 = vmax.xlane.f32.xlu2 %v807_v6 }
  0xd2   :  { %329 = vmax.xlane.f32.xlu0 %v830_v21 }
  0xd3   :  { %267 = vadd.xlane.f32.xlu1 %v244_v31  ;;  %259 = vadd.xlane.f32.xlu2 %v240_v32 }
  0xda   :  { %323 = vmax.xlane.f32.xlu0 %v871_v35 }
  0xdb   :  { %331 = vmax.xlane.f32.xlu1 %v874_v36  ;;  %275 = vadd.xlane.f32.xlu2 %v248_v37 }
  0xe2   :  { %283 = vadd.xlane.f32.xlu0 %v252_v39 }
  0xfe   :  { %v882_v40 = vpop.xlane.xlu2 %309  ;;  %v884_v42 = vpop.xlane.xlu1 %301 }
  0xff   :  { %v333_v43 = vsub.f32 %v781_v50, %v884_v42  ;;  %v337_v56 = vsub.f32 %v784_v51, %v882_v40 }
 0x101   :  { %v349_v44 = vmul.f32 1.442695, %v333_v43  ;;  %v357_v61 = vmul.f32 1.442695, %v337_v56 }
 0x103   :  { %547 = vpow2.f32 %v349_v44 }
 0x106   :  { %v888_v45 = vpop.xlane.xlu1 %253  ;;  %v890_v46 = vpop.xlane.xlu2 %269 }
 0x107   :  { %v413_v47 = vsub.f32 %v884_v42, %v888_v45 }
 0x109   :  { %v548_v41 = vpop.eup %547 }
 0x10a   :  { %381 = vadd.xlane.f32.xlu2 %v548_v41 }
 0x10d   :  { %v894_v48 = vpop.xlane.xlu0 %277 }
 0x10e   :  { %v896_v49 = vpop.xlane.xlu1 %261  ;;  %v898_v52 = vpop.xlane.xlu2 %303 }
 0x10f   :  { %v417_v50 = vsub.f32 %v882_v40, %v896_v49  ;;  %v334_v53 = vsub.f32 %v802_v1, %v898_v52 }
 0x111   :  { %v351_v54 = vmul.f32 1.442695, %v334_v53 }
 0x113   :  { %549 = vpow2.f32 %v351_v54 }
 0x114   :  { %551 = vpow2.f32 %v357_v61 }
 0x115   :  { %v906_v57 = vpop.xlane.xlu0 %311 }
 0x116   :  { %v908_v58 = vpop.xlane.xlu1 %279  ;;  %v910_v59 = vpop.xlane.xlu2 %255  ;;  %v338_v15 = vsub.f32 %v811_v7, %v906_v57 }
 0x117   :  { %v414_v62 = vsub.f32 %v898_v52, %v910_v59  ;;  %v437_v52 = vmul.f32 1.442695, %v417_v50 }
 0x118   :  { %v359_v17 = vmul.f32 1.442695, %v338_v15 }
 0x119   :  { %v550_v63 = vpop.eup %549 }
 0x11a   :  { %383 = vadd.xlane.f32.xlu0 %v550_v63  ;;  %v552_v3 = vpop.eup %551 }
 0x11d   :  { %v914_v0 = vpop.xlane.xlu0 %271 }
 0x11e   :  { %v916_v1 = vpop.xlane.xlu1 %273  ;;  %v918_v2 = vpop.xlane.xlu2 %263 }
 0x11f   :  { %v418_v51 = vsub.f32 %v906_v57, %v918_v2 }
 0x122   :  { %389 = vadd.xlane.f32.xlu0 %v552_v3 }
 0x125   :  { %v922_v4 = vpop.xlane.xlu0 %305 }
 0x126   :  { %v335_v5 = vsub.f32 %v833_v22, %v922_v4  ;;  %v926_v8 = vpop.xlane.xlu1 %307  ;;  %v928_v9 = vpop.xlane.xlu2 %281 }
 0x127   :  { %v336_v10 = vsub.f32 %v836_v23, %v926_v8 }
 0x128   :  { %v353_v11 = vmul.f32 1.442695, %v335_v5 }
 0x129   :  { %v355_v12 = vmul.f32 1.442695, %v336_v10 }
 0x12a   :  { %553 = vpow2.f32 %v353_v11 }
 0x12b   :  { %555 = vpow2.f32 %v355_v12 }
 0x12c   :  { %557 = vpow2.f32 %v359_v17 }
 0x12d   :  { %v934_v16 = vpop.xlane.xlu0 %257 }
 0x12e   :  { %v415_v18 = vsub.f32 %v922_v4, %v934_v16  ;;  %v938_v19 = vpop.xlane.xlu1 %313  ;;  %v940_v20 = vpop.xlane.xlu2 %321  ;;  %v439_v4 = vmul.f32 1.442695, %v418_v51 }
 0x12f   :  { %v339_v22 = vsub.f32 %v845_v26, %v938_v19  ;;  %v343_v24 = vsub.f32 %v821_v14, %v940_v20  ;;  %v423_v7 = vsub.f32 %v940_v20, %v916_v1 }
 0x130   :  { %v554_v23 = vpop.eup %553  ;;  %v433_v42 = vmul.f32 1.442695, %v415_v18 }
 0x131   :  { %v556_v25 = vpop.eup %555  ;;  %v361_v27 = vmul.f32 1.442695, %v339_v22  ;;  %385 = vadd.xlane.f32.xlu1 %v554_v23  ;;  %v369_v28 = vmul.f32 1.442695, %v343_v24 }
 0x132   :  { %387 = vadd.xlane.f32.xlu2 %v556_v25  ;;  %v558_v34 = vpop.eup %557 }
 0x133   :  { %559 = vpow2.f32 %v361_v27 }
 0x134   :  { %561 = vpow2.f32 %v369_v28 }
 0x135   :  { %v948_v29 = vpop.xlane.xlu0 %265 }
 0x136   :  { %v419_v26 = vsub.f32 %v938_v19, %v948_v29  ;;  %v952_v31 = vpop.xlane.xlu1 %319  ;;  %v954_v32 = vpop.xlane.xlu2 %315 }
 0x137   :  { %v342_v14 = vsub.f32 %v818_v13, %v952_v31  ;;  %v422_v33 = vsub.f32 %v952_v31, %v914_v0  ;;  %v340_v37 = vsub.f32 %v854_v30, %v954_v32 }
 0x139   :  { %v560_v38 = vpop.eup %559  ;;  %v367_v39 = vmul.f32 1.442695, %v342_v14  ;;  %391 = vadd.xlane.f32.xlu1 %v558_v34  ;;  %v363_v44 = vmul.f32 1.442695, %v340_v37 }
 0x13a   :  { %v562_v43 = vpop.eup %561  ;;  %393 = vadd.xlane.f32.xlu2 %v560_v38 }
 0x13b   :  { %563 = vpow2.f32 %v367_v39  ;;  %401 = vadd.xlane.f32.xlu0 %v562_v43 }
 0x13c   :  { %565 = vpow2.f32 %v363_v44 }
 0x13d   :  { %v962_v41 = vpop.xlane.xlu0 %317 }
 0x13e   :  { %v341_v13 = vsub.f32 %v791_v55, %v962_v41  ;;  %v421_v53 = vsub.f32 %v962_v41, %v890_v46  ;;  %v968_v54 = vpop.xlane.xlu1 %325  ;;  %v970_v30 = vpop.xlane.xlu2 %327 }
 0x13f   :  { %v345_v56 = vsub.f32 %v796_v60, %v968_v54  ;;  %v425_v61 = vsub.f32 %v968_v54, %v894_v48  ;;  %v346_v3 = vsub.f32 %v807_v6, %v970_v30  ;;  %v426_v55 = vsub.f32 %v970_v30, %v908_v58 }
 0x140   :  { %v365_v63 = vmul.f32 1.442695, %v341_v13  ;;  %v445_v19 = vmul.f32 1.442695, %v421_v53 }
 0x141   :  { %v564_v5 = vpop.eup %563  ;;  %v375_v11 = vmul.f32 1.442695, %v346_v3  ;;  %v373_v12 = vmul.f32 1.442695, %v345_v56 }
 0x142   :  { %v566_v10 = vpop.eup %565  ;;  %567 = vpow2.f32 %v365_v63  ;;  %399 = vadd.xlane.f32.xlu2 %v564_v5 }
 0x143   :  { %395 = vadd.xlane.f32.xlu0 %v566_v10  ;;  %569 = vpow2.f32 %v375_v11 }
 0x144   :  { %571 = vpow2.f32 %v373_v12 }
 0x145   :  { %v980_v15 = vpop.xlane.xlu0 %329 }
 0x146   :  { %v427_v60 = vsub.f32 %v980_v15, %v928_v9  ;;  %v984_v17 = vpop.xlane.xlu1 %267  ;;  %v260_v6 = vpop.xlane.xlu2 %259  ;;  %v347_v44 = vsub.f32 %v830_v21, %v980_v15  ;;  %v431_v21 = vmul.f32 1.442695, %v414_v62 }
 0x147   :  { %v420_v22 = vsub.f32 %v954_v32, %v984_v17  ;;  %v416_v45 = vsub.f32 %v926_v8, %v260_v6  ;;  %v441_v6 = vmul.f32 1.442695, %v419_v26 }
 0x148   :  { %v568_v23 = vpop.eup %567  ;;  %v377_v13 = vmul.f32 1.442695, %v347_v44 }
 0x149   :  { %397 = vadd.xlane.f32.xlu1 %v568_v23  ;;  %v570_v24 = vpop.eup %569  ;;  %v443_v57 = vmul.f32 1.442695, %v420_v22 }
 0x14a   :  { %v572_v25 = vpop.eup %571 }
 0x14b   :  { %407 = vadd.xlane.f32.xlu0 %v570_v24  ;;  %405 = vadd.xlane.f32.xlu2 %v572_v25 }
 0x14d   :  { %v988_v27 = vpop.xlane.xlu0 %323 }
 0x14e   :  { %v344_v28 = vsub.f32 %v871_v35, %v988_v27  ;;  %v992_v14 = vpop.xlane.xlu1 %331  ;;  %v994_v34 = vpop.xlane.xlu2 %275 }
 0x14f   :  { %v348_v37 = vsub.f32 %v874_v36, %v992_v14  ;;  %v424_v39 = vsub.f32 %v988_v27, %v994_v34  ;;  %v429_v36 = vmul.f32 1.442695, %v413_v47  ;;  %v435_v47 = vmul.f32 1.442695, %v416_v45 }
 0x150   :  { %v371_v38 = vmul.f32 1.442695, %v344_v28 }
 0x151   :  { %v379_v43 = vmul.f32 1.442695, %v348_v37 }
 0x152   :  { %573 = vpow2.f32 %v371_v38 }
 0x153   :  { %575 = vpow2.f32 %v379_v43 }
 0x154   :  { %577 = vpow2.f32 %v377_v13 }
 0x155   :  { %579 = vpow2.f32 %v429_v36  ;;  %v1008_v11 = vpop.xlane.xlu0 %283 }
 0x156   :  { %581 = vpow2.f32 %v431_v21 }
 0x157   :  { %583 = vpow2.f32 %v433_v42 }
 0x158   :  { %v574_v56 = vpop.eup %573  ;;  %585 = vpow2.f32 %v435_v47 }
 0x159   :  { %v576_v35 = vpop.eup %575  ;;  %403 = vadd.xlane.f32.xlu1 %v574_v56  ;;  %587 = vpow2.f32 %v437_v52  ;;  %v447_v56 = vmul.f32 1.442695, %v422_v33  ;;  %v453_v33 = vmul.f32 1.442695, %v425_v61 }
 0x15a   :  { %411 = vadd.xlane.f32.xlu2 %v576_v35  ;;  %v578_v63 = vpop.eup %577  ;;  %589 = vpow2.f32 %v439_v4  ;;  %v449_v35 = vmul.f32 1.442695, %v423_v7  ;;  %v455_v7 = vmul.f32 1.442695, %v426_v55 }
 0x15b   :  { %v580_v3 = vpop.eup %579  ;;  %591 = vpow2.f32 %v441_v6 }
 0x15c   :  { %v582_v12 = vpop.eup %581  ;;  %593 = vpow2.f32 %v443_v57 }
 0x15d   :  { %v584_v25 = vpop.eup %583  ;;  %595 = vpow2.f32 %v445_v19 }
 0x15e   :  { %v586_v62 = vpop.eup %585  ;;  %597 = vpow2.f32 %v447_v56 }
 0x15f   :  { %v588_v16 = vpop.eup %587  ;;  %599 = vpow2.f32 %v449_v35 }
 0x160   :  { %v590_v49 = vpop.eup %589 }
 0x161   :  { %409 = vadd.xlane.f32.xlu1 %v578_v63  ;;  %v592_v51 = vpop.eup %591  ;;  %v451_v63 = vmul.f32 1.442695, %v424_v39  ;;  %v457_v39 = vmul.f32 1.442695, %v427_v60 }
 0x162   :  { %v594_v26 = vpop.eup %593 }
 0x163   :  { %v596_v17 = vpop.eup %595  ;;  %601 = vpow2.f32 %v451_v63 }
 0x164   :  { %v598_v41 = vpop.eup %597  ;;  %603 = vpow2.f32 %v453_v33 }
 0x165   :  { %v600_v0 = vpop.eup %599  ;;  %605 = vpow2.f32 %v455_v7 }
 0x166   :  { %607 = vpow2.f32 %v457_v39 }
 0x169   :  { %v602_v1 = vpop.eup %601 }
 0x16a   :  { %v604_v27 = vpop.eup %603 }
 0x16b   :  { %v606_v54 = vpop.eup %605 }
 0x16c   :  { %v608_v30 = vpop.eup %607 }
 0x17d   :  { %v382_v5 = vpop.xlane.xlu2 %381 }
 0x17e   :  { %v461_v10 = vmul.f32 %v580_v3, %v382_v5  ;;  %v428_v5 = vsub.f32 %v992_v14, %v1008_v11 }
 0x180   :  { %477 = vxpose.xlu0.b32.start [1/16] (narrow) %v461_v10, 8  ;;  %v459_v10 = vmul.f32 1.442695, %v428_v5 }
 0x182   :  { %609 = vpow2.f32 %v459_v10 }
 0x18d   :  { %v384_v23 = vpop.xlane.xlu0 %383 }
 0x18e   :  { %v462_v24 = vmul.f32 %v582_v12, %v384_v23  ;;  %v610_v12 = vpop.eup %609 }
 0x190   :  { %478 = vxpose.xlu0.b32.cont [2/16] (narrow) %v462_v24, 8 }
 0x195   :  { %v390_v8 = vpop.xlane.xlu0 %389 }
 0x196   :  { %v465_v18 = vmul.f32 %v588_v16, %v390_v8 }
 0x1a4   :  { %v386_v28 = vpop.xlane.xlu1 %385 }
 0x1a5   :  { %v463_v37 = vmul.f32 %v584_v25, %v386_v28  ;;  %v388_v59 = vpop.xlane.xlu2 %387 }
 0x1a6   :  { %v464_v38 = vmul.f32 %v586_v62, %v388_v59 }
 0x1a7   :  { %479 = vxpose.xlu0.b32.cont [3/16] (narrow) %v463_v37, 8 }
 0x1ac   :  { %v392_v40 = vpop.xlane.xlu1 %391 }
 0x1ad   :  { %v466_v50 = vmul.f32 %v590_v49, %v392_v40  ;;  %v394_v2 = vpop.xlane.xlu2 %393 }
 0x1ae   :  { %v402_v43 = vpop.xlane.xlu0 %401  ;;  %v467_v44 = vmul.f32 %v592_v51, %v394_v2 }
 0x1af   :  { %480 = vxpose.xlu0.b32.cont [4/16] (narrow) %v464_v38, 8  ;;  %v471_v31 = vmul.f32 %v600_v0, %v402_v43 }
 0x1b5   :  { %v400_v46 = vpop.xlane.xlu2 %399 }
 0x1b6   :  { %v396_v29 = vpop.xlane.xlu0 %395  ;;  %v470_v53 = vmul.f32 %v598_v41, %v400_v46 }
 0x1b7   :  { %481 = vxpose.xlu0.b32.cont [5/16] (narrow) %v465_v18, 8  ;;  %v468_v13 = vmul.f32 %v594_v26, %v396_v29 }
 0x1bc   :  { %v398_v32 = vpop.xlane.xlu1 %397 }
 0x1bd   :  { %v469_v22 = vmul.f32 %v596_v17, %v398_v32 }
 0x1be   :  { %v406_v3 = vpop.xlane.xlu2 %405  ;;  %v408_v48 = vpop.xlane.xlu0 %407 }
 0x1bf   :  { %482 = vxpose.xlu0.b32.cont [6/16] (narrow) %v466_v50, 8  ;;  %v473_v34 = vmul.f32 %v604_v27, %v406_v3  ;;  %v474_v61 = vmul.f32 %v606_v54, %v408_v48 }
 0x1c7   :  { %483 = vxpose.xlu0.b32.cont [7/16] (narrow) %v467_v44, 8 }
 0x1cc   :  { %v404_v36 = vpop.xlane.xlu1 %403 }
 0x1cd   :  { %v472_v20 = vmul.f32 %v602_v1, %v404_v36  ;;  %v412_v21 = vpop.xlane.xlu2 %411 }
 0x1ce   :  { %v476_v23 = vmul.f32 %v610_v12, %v412_v21 }
 0x1cf   :  { %484 = vxpose.xlu0.b32.cont [8/16] (narrow) %v468_v13, 8 }
 0x1d4   :  { %v410_v58 = vpop.xlane.xlu1 %409 }
 0x1d5   :  { %v475_v55 = vmul.f32 %v608_v30, %v410_v58 }
 0x1d7   :  { %485 = vxpose.xlu0.b32.cont [9/16] (narrow) %v469_v22, 8 }
 0x1df   :  { %486 = vxpose.xlu0.b32.cont [10/16] (narrow) %v470_v53, 8 }
 0x1e7   :  { %487 = vxpose.xlu0.b32.cont [11/16] (narrow) %v471_v31, 8 }
 0x1ef   :  { %488 = vxpose.xlu0.b32.cont [12/16] (narrow) %v472_v20, 8 }
 0x1f7   :  { %489 = vxpose.xlu0.b32.cont [13/16] (narrow) %v473_v34, 8 }
 0x1ff   :  { %490 = vxpose.xlu0.b32.cont [14/16] (narrow) %v474_v61, 8 }
 0x207   :  { %491 = vxpose.xlu0.b32.cont [15/16] (narrow) %v475_v55, 8 }
 0x20f   :  { %492 = vxpose.xlu0.b32.end [16/16] (narrow) %v476_v23, 8 }
 0x23b   :  { %v493_v9 = vpop.trf.xlu0 }
 0x23c   :  { %509 = vst [vmem:[%s1056_s4] sm:$0x1] %v493_v9 }

</bundles_post_ra>
